<compile_context>
chip_gen: v7x
topology: tpu7x:2x2x1
jax: 0.10.0
libtpu: 0.0.40
codegen_flags: <defaults>
</compile_context>

<pallas_src>
import functools

import jax
import jax.numpy as jnp
import numpy as np
from jax.experimental import pallas as pl
from jax.experimental.pallas import tpu as pltpu


def _attn_kernel(q_ref, k_ref, v_ref,
                 wq_ref, bq_ref, wk_ref, bk_ref, wv_ref, bv_ref,
                 wo_ref, bo_ref,
                 out_ref, *, scale):
    f32 = jnp.float32
    num_heads = wq_ref.shape[0]
    sq, dim = q_ref.shape[1], q_ref.shape[2]
    sk = k_ref.shape[1]
    mxu_dtype = q_ref.dtype          # bf16 inputs stay bf16 on the MXU

    # Replicate the (tiny) per-batch activations across the head axis so the
    # projections are plain batched matmuls (single leading batch dim = heads)
    # — the only dot_general form we rely on Mosaic to lower to MXU pushes.
    qx = jnp.broadcast_to(q_ref[0], (num_heads, sq, dim))
    kx = jnp.broadcast_to(k_ref[0], (num_heads, sk, dim))
    vx = jnp.broadcast_to(v_ref[0], (num_heads, sk, dim))

    # Head-major input projections: (H,S,dim) @ (H,dim,hd) -> (H,S,hd), f32 acc.
    qp = jnp.einsum("hsd,hde->hse", qx, wq_ref[...],
                    preferred_element_type=f32) + bq_ref[...].astype(f32)
    kp = jnp.einsum("hsd,hde->hse", kx, wk_ref[...],
                    preferred_element_type=f32) + bk_ref[...].astype(f32)
    vp = jnp.einsum("hsd,hde->hse", vx, wv_ref[...],
                    preferred_element_type=f32) + bv_ref[...].astype(f32)

    # Fold the softmax scale onto q (hd-wide, in f32, before any MXU cast)
    # instead of onto the (Sq, Sk) score matrix.
    qp = qp * scale

    # Scores: contract head_dim directly on both operands (no explicit kh.T).
    s = jnp.einsum("hqd,hkd->hqk",
                   qp.astype(mxu_dtype), kp.astype(mxu_dtype),
                   preferred_element_type=f32)

    # Softmax over keys, kept in f32 (VPU/EUP); normalization is deferred to
    # after the P@V matmul so the reciprocal multiply touches (H,Sq,hd)
    # elements, not (H,Sq,Sk).
    m = jnp.max(s, axis=-1, keepdims=True)        # XLU reduce
    e = jnp.exp(s - m)                            # EUP exp, f32
    denom = jnp.sum(e, axis=-1, keepdims=True)    # XLU reduce

    # Context: (H,Sq,Sk) @ (H,Sk,hd) -> (H,Sq,hd), then normalize.
    ctx = jnp.einsum("hqk,hkd->hqd",
                     e.astype(mxu_dtype), vp.astype(mxu_dtype),
                     preferred_element_type=f32)
    ctx = ctx * pl.reciprocal(denom, approx=True)   # EUP slot, ~free

    # Output projection with head-major weight slabs, reduced over heads
    # (replaces concatenate + (Sq, H*hd) @ (H*hd, dim)).
    out = jnp.einsum("hqd,hde->hqe",
                     ctx.astype(mxu_dtype), wo_ref[...],
                     preferred_element_type=f32)
    out = jnp.sum(out, axis=0) + bo_ref[...].astype(f32)

    # dim=32 < 128 lanes -> stores are lane-masked; a lane-dense (B, Sq*dim)
    # output would need an in-kernel lane-merging relayout — not worth it at
    # these toy sizes, only relevant if dim/Sq grow.
    out_ref[0] = out.astype(out_ref.dtype)


def _full_spec(shape):
    n = len(shape)
    return pl.BlockSpec(shape, lambda b, _n=n: (0,) * _n)


def attention_forward(q, k, v, packed, *, scale):
    """Pallas implementation of Attention.forward(q, k, v)."""
    B, Sq, dim = q.shape
    Sk = k.shape[1]
    (wq_h, bq_h, wk_h, bk_h, wv_h, bv_h, wo_h, bo) = packed

    kernel = functools.partial(_attn_kernel, scale=scale)

    return pl.pallas_call(
        kernel,
        out_shape=jax.ShapeDtypeStruct((B, Sq, dim), q.dtype),
        grid=(B,),
        in_specs=[
            pl.BlockSpec((1, Sq, dim), lambda b: (b, 0, 0)),   # q
            pl.BlockSpec((1, Sk, dim), lambda b: (b, 0, 0)),   # k
            pl.BlockSpec((1, Sk, dim), lambda b: (b, 0, 0)),   # v
            _full_spec(wq_h.shape), _full_spec(bq_h.shape),
            _full_spec(wk_h.shape), _full_spec(bk_h.shape),
            _full_spec(wv_h.shape), _full_spec(bv_h.shape),
            _full_spec(wo_h.shape), _full_spec(bo.shape),
        ],
        out_specs=pl.BlockSpec((1, Sq, dim), lambda b: (b, 0, 0)),
        compiler_params=pltpu.CompilerParams(
            dimension_semantics=("parallel",)),
    )(q, k, v, wq_h, bq_h, wk_h, bk_h, wv_h, bv_h, wo_h, bo)


def pack_params(params, num_heads):
    """Repack PyTorch-layout Linear params into head-major kernel slabs."""
    qkv_dim, dim = params["wq"].shape
    hd = qkv_dim // num_heads

    def in_proj(w, b):                           # w: (qkv, dim), b: (qkv,)
        w_h = jnp.transpose(w.T.reshape(dim, num_heads, hd), (1, 0, 2))
        return w_h, b.reshape(num_heads, 1, hd)  # (H, dim, hd), (H, 1, hd)

    wq_h, bq_h = in_proj(params["wq"], params["bq"])
    wk_h, bk_h = in_proj(params["wk"], params["bk"])
    wv_h, bv_h = in_proj(params["wv"], params["bv"])
    wo_h = params["wo"].T.reshape(num_heads, hd, dim)   # (H, hd, dim)
    bo = params["bo"].reshape(1, dim)
    return (wq_h, bq_h, wk_h, bk_h, wv_h, bv_h, wo_h, bo)


def reference_forward(q, k, v, params, *, num_heads):
    """Pure-JAX reference mirroring the PyTorch module (PyTorch param layout)."""
    qkv_dim = params["wq"].shape[0]
    head_dim = qkv_dim // num_heads
    scale = float(head_dim) ** (-0.5)
    B, Sq, _ = q.shape

    def lin(x, w, b):
        return x @ w.T + b

    qp = lin(q, params["wq"], params["bq"]).reshape(B, Sq, num_heads, head_dim)
    kp = lin(k, params["wk"], params["bk"]).reshape(B, -1, num_heads, head_dim)
    vp = lin(v, params["wv"], params["bv"]).reshape(B, -1, num_heads, head_dim)
    s = jnp.einsum("bqhd,bkhd->bhqk", qp, kp) * scale
    p = jax.nn.softmax(s, axis=-1)
    o = jnp.einsum("bhqk,bkhd->bqhd", p, vp).reshape(B, Sq, qkv_dim)
    return (o @ params["wo"].T + params["bo"]).astype(q.dtype)


def make_params(key, dim, qkv_dim):
    """Deterministic synthetic params in PyTorch Linear layout: W:(out,in), b:(out,)."""
    ks = jax.random.split(key, 8)
    s = 0.05
    return {
        "wq": s * jax.random.normal(ks[0], (qkv_dim, dim), jnp.float32),
        "bq": s * jax.random.normal(ks[1], (qkv_dim,), jnp.float32),
        "wk": s * jax.random.normal(ks[2], (qkv_dim, dim), jnp.float32),
        "bk": s * jax.random.normal(ks[3], (qkv_dim,), jnp.float32),
        "wv": s * jax.random.normal(ks[4], (qkv_dim, dim), jnp.float32),
        "bv": s * jax.random.normal(ks[5], (qkv_dim,), jnp.float32),
        "wo": s * jax.random.normal(ks[6], (dim, qkv_dim), jnp.float32),
        "bo": s * jax.random.normal(ks[7], (dim,), jnp.float32),
    }


if __name__ == "__main__":
    # Small shapes consistent with the module: dim=32, num_heads=4,
    # attn_ratio=1 => qkv_dim=32, head_dim=8.
    B, Sq, Sk, dim, num_heads = 2, 8, 8, 32, 4
    qkv_dim = dim  # attn_ratio = 1
    head_dim = qkv_dim // num_heads
    scale = float(head_dim) ** (-0.5)

    key = jax.random.PRNGKey(0)
    kq, kk, kv, kparam = jax.random.split(key, 4)
    q = jax.random.normal(kq, (B, Sq, dim), jnp.float32)
    k = jax.random.normal(kk, (B, Sk, dim), jnp.float32)
    v = jax.random.normal(kv, (B, Sk, dim), jnp.float32)
    params = make_params(kparam, dim, qkv_dim)
    packed = pack_params(params, num_heads)

    out = attention_forward(q, k, v, packed, scale=scale)
    out = jax.block_until_ready(out)

    ref = reference_forward(q, k, v, params, num_heads=num_heads)
    # Tolerance accounts for the approx (EUP) reciprocal in the softmax.
    np.testing.assert_allclose(np.asarray(out), np.asarray(ref),
                               rtol=2e-3, atol=2e-3)
    print("KERNEL_OK")
</pallas_src>

<mosaic_0001>
module attributes {stable_mosaic.version = 11 : i64} {
  func.func @_attn_kernel(%arg0: i32, %arg1: memref<1x8x32xf32, #tpu.memory_space<vmem>>, %arg2: memref<1x8x32xf32, #tpu.memory_space<vmem>>, %arg3: memref<1x8x32xf32, #tpu.memory_space<vmem>>, %arg4: memref<4x32x8xf32, #tpu.memory_space<vmem>>, %arg5: memref<4x1x8xf32, #tpu.memory_space<vmem>>, %arg6: memref<4x32x8xf32, #tpu.memory_space<vmem>>, %arg7: memref<4x1x8xf32, #tpu.memory_space<vmem>>, %arg8: memref<4x32x8xf32, #tpu.memory_space<vmem>>, %arg9: memref<4x1x8xf32, #tpu.memory_space<vmem>>, %arg10: memref<4x8x32xf32, #tpu.memory_space<vmem>>, %arg11: memref<1x32xf32, #tpu.memory_space<vmem>>, %arg12: memref<1x8x32xf32, #tpu.memory_space<vmem>>) attributes {dimension_semantics = [#tpu.dimension_semantics<parallel>], iteration_bounds = array<i64: 2>, scalar_prefetch = 0 : i64, scratch_operands = 0 : i64, tpu.core_type = #tpu.core_type<tc>, window_params = [{transform_indices = @transform_0, window_bounds = array<i64: 1, 8, 32>}, {transform_indices = @transform_1, window_bounds = array<i64: 1, 8, 32>}, {transform_indices = @transform_2, window_bounds = array<i64: 1, 8, 32>}, {pipeline_mode = #tpu.pipeline_mode<synchronous>, transform_indices = @transform_3, window_bounds = array<i64: 4, 32, 8>}, {pipeline_mode = #tpu.pipeline_mode<synchronous>, transform_indices = @transform_4, window_bounds = array<i64: 4, 1, 8>}, {pipeline_mode = #tpu.pipeline_mode<synchronous>, transform_indices = @transform_5, window_bounds = array<i64: 4, 32, 8>}, {pipeline_mode = #tpu.pipeline_mode<synchronous>, transform_indices = @transform_6, window_bounds = array<i64: 4, 1, 8>}, {pipeline_mode = #tpu.pipeline_mode<synchronous>, transform_indices = @transform_7, window_bounds = array<i64: 4, 32, 8>}, {pipeline_mode = #tpu.pipeline_mode<synchronous>, transform_indices = @transform_8, window_bounds = array<i64: 4, 1, 8>}, {pipeline_mode = #tpu.pipeline_mode<synchronous>, transform_indices = @transform_9, window_bounds = array<i64: 4, 8, 32>}, {pipeline_mode = #tpu.pipeline_mode<synchronous>, transform_indices = @transform_10, window_bounds = array<i64: 1, 32>}, {transform_indices = @transform_11, window_bounds = array<i64: 1, 8, 32>}]} {
    %c0 = arith.constant 0 : index
    %c0_0 = arith.constant 0 : index
    %c0_1 = arith.constant 0 : index
    %0 = vector.load %arg1[%c0, %c0_0, %c0_1] : memref<1x8x32xf32, #tpu.memory_space<vmem>>, vector<1x8x32xf32>
    %1 = vector.shape_cast %0 : vector<1x8x32xf32> to vector<8x32xf32>
    %2 = vector.shape_cast %1 : vector<8x32xf32> to vector<1x8x32xf32>
    %3 = vector.broadcast %2 : vector<1x8x32xf32> to vector<4x8x32xf32>
    %c0_2 = arith.constant 0 : index
    %c0_3 = arith.constant 0 : index
    %c0_4 = arith.constant 0 : index
    %4 = vector.load %arg2[%c0_2, %c0_3, %c0_4] : memref<1x8x32xf32, #tpu.memory_space<vmem>>, vector<1x8x32xf32>
    %5 = vector.shape_cast %4 : vector<1x8x32xf32> to vector<8x32xf32>
    %6 = vector.shape_cast %5 : vector<8x32xf32> to vector<1x8x32xf32>
    %7 = vector.broadcast %6 : vector<1x8x32xf32> to vector<4x8x32xf32>
    %c0_5 = arith.constant 0 : index
    %c0_6 = arith.constant 0 : index
    %c0_7 = arith.constant 0 : index
    %8 = vector.load %arg3[%c0_5, %c0_6, %c0_7] : memref<1x8x32xf32, #tpu.memory_space<vmem>>, vector<1x8x32xf32>
    %9 = vector.shape_cast %8 : vector<1x8x32xf32> to vector<8x32xf32>
    %10 = vector.shape_cast %9 : vector<8x32xf32> to vector<1x8x32xf32>
    %11 = vector.broadcast %10 : vector<1x8x32xf32> to vector<4x8x32xf32>
    %c0_8 = arith.constant 0 : index
    %c0_9 = arith.constant 0 : index
    %c0_10 = arith.constant 0 : index
    %12 = vector.load %arg4[%c0_8, %c0_9, %c0_10] : memref<4x32x8xf32, #tpu.memory_space<vmem>>, vector<4x32x8xf32>
    "tpu.trace_start"() <{level = 10 : i32, message = "hsd,hde->hse"}> : () -> ()
    %cst = arith.constant dense<0.000000e+00> : vector<4x8x8xf32>
    %13 = tpu.matmul %3, %12, %cst {dimension_numbers = #tpu.dot_dimension_numbers<[2], [1], [1], [2], [0, 0, 0, 1, 1, 2], [0], [0]>} : vector<4x8x32xf32>, vector<4x32x8xf32>, vector<4x8x8xf32> -> vector<4x8x8xf32>
    "tpu.trace_stop"() : () -> ()
    %c0_11 = arith.constant 0 : index
    %c0_12 = arith.constant 0 : index
    %c0_13 = arith.constant 0 : index
    %14 = vector.load %arg5[%c0_11, %c0_12, %c0_13] : memref<4x1x8xf32, #tpu.memory_space<vmem>>, vector<4x1x8xf32>
    %15 = vector.broadcast %14 : vector<4x1x8xf32> to vector<4x8x8xf32>
    %16 = arith.addf %13, %15 : vector<4x8x8xf32>
    %c0_14 = arith.constant 0 : index
    %c0_15 = arith.constant 0 : index
    %c0_16 = arith.constant 0 : index
    %17 = vector.load %arg6[%c0_14, %c0_15, %c0_16] : memref<4x32x8xf32, #tpu.memory_space<vmem>>, vector<4x32x8xf32>
    "tpu.trace_start"() <{level = 10 : i32, message = "hsd,hde->hse"}> : () -> ()
    %cst_17 = arith.constant dense<0.000000e+00> : vector<4x8x8xf32>
    %18 = tpu.matmul %7, %17, %cst_17 {dimension_numbers = #tpu.dot_dimension_numbers<[2], [1], [1], [2], [0, 0, 0, 1, 1, 2], [0], [0]>} : vector<4x8x32xf32>, vector<4x32x8xf32>, vector<4x8x8xf32> -> vector<4x8x8xf32>
    "tpu.trace_stop"() : () -> ()
    %c0_18 = arith.constant 0 : index
    %c0_19 = arith.constant 0 : index
    %c0_20 = arith.constant 0 : index
    %19 = vector.load %arg7[%c0_18, %c0_19, %c0_20] : memref<4x1x8xf32, #tpu.memory_space<vmem>>, vector<4x1x8xf32>
    %20 = vector.broadcast %19 : vector<4x1x8xf32> to vector<4x8x8xf32>
    %21 = arith.addf %18, %20 : vector<4x8x8xf32>
    %c0_21 = arith.constant 0 : index
    %c0_22 = arith.constant 0 : index
    %c0_23 = arith.constant 0 : index
    %22 = vector.load %arg8[%c0_21, %c0_22, %c0_23] : memref<4x32x8xf32, #tpu.memory_space<vmem>>, vector<4x32x8xf32>
    "tpu.trace_start"() <{level = 10 : i32, message = "hsd,hde->hse"}> : () -> ()
    %cst_24 = arith.constant dense<0.000000e+00> : vector<4x8x8xf32>
    %23 = tpu.matmul %11, %22, %cst_24 {dimension_numbers = #tpu.dot_dimension_numbers<[2], [1], [1], [2], [0, 0, 0, 1, 1, 2], [0], [0]>} : vector<4x8x32xf32>, vector<4x32x8xf32>, vector<4x8x8xf32> -> vector<4x8x8xf32>
    "tpu.trace_stop"() : () -> ()
    %c0_25 = arith.constant 0 : index
    %c0_26 = arith.constant 0 : index
    %c0_27 = arith.constant 0 : index
    %24 = vector.load %arg9[%c0_25, %c0_26, %c0_27] : memref<4x1x8xf32, #tpu.memory_space<vmem>>, vector<4x1x8xf32>
    %25 = vector.broadcast %24 : vector<4x1x8xf32> to vector<4x8x8xf32>
    %26 = arith.addf %23, %25 : vector<4x8x8xf32>
    %cst_28 = arith.constant 0.353553385 : f32
    %27 = vector.broadcast %cst_28 : f32 to vector<4x8x8xf32>
    %28 = arith.mulf %16, %27 : vector<4x8x8xf32>
    "tpu.trace_start"() <{level = 10 : i32, message = "hqd,hkd->hqk"}> : () -> ()
    %cst_29 = arith.constant dense<0.000000e+00> : vector<4x8x8xf32>
    %29 = tpu.matmul %28, %21, %cst_29 {dimension_numbers = #tpu.dot_dimension_numbers<[2], [2], [1], [1], [0, 0, 0, 1, 1, 1], [0], [0]>} : vector<4x8x8xf32>, vector<4x8x8xf32>, vector<4x8x8xf32> -> vector<4x8x8xf32>
    "tpu.trace_stop"() : () -> ()
    %cst_30 = arith.constant dense<0xFF800000> : vector<4x8xf32>
    %30 = vector.multi_reduction <maximumf>, %29, %cst_30 [2] : vector<4x8x8xf32> to vector<4x8xf32>
    %31 = vector.shape_cast %30 : vector<4x8xf32> to vector<4x8x1xf32>
    %32 = vector.broadcast %31 : vector<4x8x1xf32> to vector<4x8x8xf32>
    %33 = arith.subf %29, %32 : vector<4x8x8xf32>
    %34 = math.exp %33 : vector<4x8x8xf32>
    %cst_31 = arith.constant dense<0.000000e+00> : vector<4x8xf32>
    %35 = vector.multi_reduction <add>, %34, %cst_31 [2] : vector<4x8x8xf32> to vector<4x8xf32>
    %36 = vector.shape_cast %35 : vector<4x8xf32> to vector<4x8x1xf32>
    "tpu.trace_start"() <{level = 10 : i32, message = "hqk,hkd->hqd"}> : () -> ()
    %cst_32 = arith.constant dense<0.000000e+00> : vector<4x8x8xf32>
    %37 = tpu.matmul %34, %26, %cst_32 {dimension_numbers = #tpu.dot_dimension_numbers<[2], [1], [1], [2], [0, 0, 0, 1, 1, 2], [0], [0]>} : vector<4x8x8xf32>, vector<4x8x8xf32>, vector<4x8x8xf32> -> vector<4x8x8xf32>
    "tpu.trace_stop"() : () -> ()
    %38 = tpu.reciprocal %36 {approx = true} : vector<4x8x1xf32> -> vector<4x8x1xf32>
    %39 = vector.broadcast %38 : vector<4x8x1xf32> to vector<4x8x8xf32>
    %40 = arith.mulf %37, %39 : vector<4x8x8xf32>
    %c0_33 = arith.constant 0 : index
    %c0_34 = arith.constant 0 : index
    %c0_35 = arith.constant 0 : index
    %41 = vector.load %arg10[%c0_33, %c0_34, %c0_35] : memref<4x8x32xf32, #tpu.memory_space<vmem>>, vector<4x8x32xf32>
    "tpu.trace_start"() <{level = 10 : i32, message = "hqd,hde->hqe"}> : () -> ()
    %cst_36 = arith.constant dense<0.000000e+00> : vector<4x8x32xf32>
    %42 = tpu.matmul %40, %41, %cst_36 {dimension_numbers = #tpu.dot_dimension_numbers<[2], [1], [1], [2], [0, 0, 0, 1, 1, 2], [0], [0]>} : vector<4x8x8xf32>, vector<4x8x32xf32>, vector<4x8x32xf32> -> vector<4x8x32xf32>
    "tpu.trace_stop"() : () -> ()
    %cst_37 = arith.constant dense<0.000000e+00> : vector<8x32xf32>
    %43 = vector.multi_reduction <add>, %42, %cst_37 [0] : vector<4x8x32xf32> to vector<8x32xf32>
    %c0_38 = arith.constant 0 : index
    %c0_39 = arith.constant 0 : index
    %44 = vector.load %arg11[%c0_38, %c0_39] : memref<1x32xf32, #tpu.memory_space<vmem>>, vector<1x32xf32>
    %45 = vector.broadcast %44 : vector<1x32xf32> to vector<8x32xf32>
    %46 = arith.addf %43, %45 : vector<8x32xf32>
    %c0_40 = arith.constant 0 : index
    %c0_41 = arith.constant 0 : index
    %c0_42 = arith.constant 0 : index
    %47 = vector.load %arg12[%c0_40, %c0_41, %c0_42] : memref<1x8x32xf32, #tpu.memory_space<vmem>>, vector<1x8x32xf32>
    %48 = vector.shape_cast %47 : vector<1x8x32xf32> to vector<8x32xf32>
    %49 = vector.shape_cast %46 : vector<8x32xf32> to vector<1x8x32xf32>
    tpu.vector_store %arg12[%c0_40, %c0_41, %c0_42], %49 {strides = array<i32>} : memref<1x8x32xf32, #tpu.memory_space<vmem>>, vector<1x8x32xf32>,
    return
  }
  func.func @transform_0(%arg0: i32) -> (i32, i32, i32) {
    %c0_i32 = arith.constant 0 : i32
    %c0_i32_0 = arith.constant 0 : i32
    %c0_i32_1 = arith.constant 0 : i32
    return %arg0, %c0_i32, %c0_i32_0 : i32, i32, i32
  }
  func.func @transform_1(%arg0: i32) -> (i32, i32, i32) {
    %c0_i32 = arith.constant 0 : i32
    %c0_i32_0 = arith.constant 0 : i32
    %c0_i32_1 = arith.constant 0 : i32
    return %arg0, %c0_i32, %c0_i32_0 : i32, i32, i32
  }
  func.func @transform_2(%arg0: i32) -> (i32, i32, i32) {
    %c0_i32 = arith.constant 0 : i32
    %c0_i32_0 = arith.constant 0 : i32
    %c0_i32_1 = arith.constant 0 : i32
    return %arg0, %c0_i32, %c0_i32_0 : i32, i32, i32
  }
  func.func @transform_3(%arg0: i32) -> (i32, i32, i32) {
    %c0_i32 = arith.constant 0 : i32
    %c0_i32_0 = arith.constant 0 : i32
    %c0_i32_1 = arith.constant 0 : i32
    %c0_i32_2 = arith.constant 0 : i32
    return %c0_i32, %c0_i32_0, %c0_i32_1 : i32, i32, i32
  }
  func.func @transform_4(%arg0: i32) -> (i32, i32, i32) {
    %c0_i32 = arith.constant 0 : i32
    %c0_i32_0 = arith.constant 0 : i32
    %c0_i32_1 = arith.constant 0 : i32
    %c0_i32_2 = arith.constant 0 : i32
    return %c0_i32, %c0_i32_0, %c0_i32_1 : i32, i32, i32
  }
  func.func @transform_5(%arg0: i32) -> (i32, i32, i32) {
    %c0_i32 = arith.constant 0 : i32
    %c0_i32_0 = arith.constant 0 : i32
    %c0_i32_1 = arith.constant 0 : i32
    %c0_i32_2 = arith.constant 0 : i32
    return %c0_i32, %c0_i32_0, %c0_i32_1 : i32, i32, i32
  }
  func.func @transform_6(%arg0: i32) -> (i32, i32, i32) {
    %c0_i32 = arith.constant 0 : i32
    %c0_i32_0 = arith.constant 0 : i32
    %c0_i32_1 = arith.constant 0 : i32
    %c0_i32_2 = arith.constant 0 : i32
    return %c0_i32, %c0_i32_0, %c0_i32_1 : i32, i32, i32
  }
  func.func @transform_7(%arg0: i32) -> (i32, i32, i32) {
    %c0_i32 = arith.constant 0 : i32
    %c0_i32_0 = arith.constant 0 : i32
    %c0_i32_1 = arith.constant 0 : i32
    %c0_i32_2 = arith.constant 0 : i32
    return %c0_i32, %c0_i32_0, %c0_i32_1 : i32, i32, i32
  }
  func.func @transform_8(%arg0: i32) -> (i32, i32, i32) {
    %c0_i32 = arith.constant 0 : i32
    %c0_i32_0 = arith.constant 0 : i32
    %c0_i32_1 = arith.constant 0 : i32
    %c0_i32_2 = arith.constant 0 : i32
    return %c0_i32, %c0_i32_0, %c0_i32_1 : i32, i32, i32
  }
  func.func @transform_9(%arg0: i32) -> (i32, i32, i32) {
    %c0_i32 = arith.constant 0 : i32
    %c0_i32_0 = arith.constant 0 : i32
    %c0_i32_1 = arith.constant 0 : i32
    %c0_i32_2 = arith.constant 0 : i32
    return %c0_i32, %c0_i32_0, %c0_i32_1 : i32, i32, i32
  }
  func.func @transform_10(%arg0: i32) -> (i32, i32) {
    %c0_i32 = arith.constant 0 : i32
    %c0_i32_0 = arith.constant 0 : i32
    %c0_i32_1 = arith.constant 0 : i32
    return %c0_i32, %c0_i32_0 : i32, i32
  }
  func.func @transform_11(%arg0: i32) -> (i32, i32, i32) {
    %c0_i32 = arith.constant 0 : i32
    %c0_i32_0 = arith.constant 0 : i32
    %c0_i32_1 = arith.constant 0 : i32
    return %arg0, %c0_i32, %c0_i32_0 : i32, i32, i32
  }
}

</mosaic_0001>

<bundles_post_ra>
// kernel: tpu_custom_call.1
= control target key start
LH: loop header
LB: loop body
LE: loop exit
PB: predicated region body
PF: predicated region fallthrough
CT: control target
= control target key end

     0   :  { %s3473_s0 = inlined_call_operand.vmem [shape: f32[2,8,32], index: 0, kind: input, shape index: {}]   ;;  %s3474_s1 = inlined_call_operand.vmem [shape: f32[2,8,32], index: 1, kind: input, shape index: {}]   ;;  %s3475_s2 = inlined_call_operand.vmem [shape: f32[2,8,32], index: 2, kind: input, shape index: {}]   ;;  %s3476_s3 = inlined_call_operand.vmem [shape: f32[4,32,8], index: 3, kind: input, shape index: {}]   ;;  %s3477_s4 = inlined_call_operand.vmem [shape: f32[4,1,8], index: 4, kind: input, shape index: {}]   ;;  %s3478_s5 = inlined_call_operand.vmem [shape: f32[4,32,8], index: 5, kind: input, shape index: {}]   ;;  %s3479_s6 = inlined_call_operand.vmem [shape: f32[4,1,8], index: 6, kind: input, shape index: {}]   ;;  %s3480_s7 = inlined_call_operand.vmem [shape: f32[4,32,8], index: 7, kind: input, shape index: {}]   ;;  %s3481_s8 = inlined_call_operand.vmem [shape: f32[4,1,8], index: 8, kind: input, shape index: {}]   ;;  %s3482_s9 = inlined_call_operand.vmem [shape: f32[4,8,32], index: 9, kind: input, shape index: {}]   ;;  %s3483_s10 = inlined_call_operand.vmem [shape: f32[1,32], index: 10, kind: input, shape index: {}]   ;;  %s3484_s11 = inlined_call_operand.hbm [shape: f32[2,8,32], index: 11, kind: output, shape index: {}]  }
   0x1   :  { %3485 = sst [smem:[#allocation6_spill]] %s3473_s0 }
   0x2   :  { %16 = vsyncpa [#allocation3], 0 }
   0x3   :  { %18 = vsyncpa [#allocation3 + $0x1], 0  ;;  %s3042_s17 = smov 0   ;;  %s3044_s18 = smov 0  }
   0x4   :  { %s3046_s19 = smov 0   ;;  %s3048_s20 = smov 0  }
   0x5 LB: > { %s3063_s21 = sadd.s32 4294967295, %s2976_s20   ;;  %s2455_s22 = sadd.s32 4294967294, %s2976_s20   ;;  %s2976_s20 = sphi %s3048_s20, %s3494_s20   ;;  %s2972_s19 = sphi %s3046_s19, %s3493_s19   ;;  %s2968_s18 = sphi %s3044_s18, %s3492_s18   ;;  %s2964_s17 = sphi %s3042_s17, %s3491_s17  }
   0x6   : > { %s3067_s23 = sadd.s32 1, %s2976_s20   ;;  %s277_s24 = sadd.s32 1, %s2972_s19 }
   0x7   : > { %s274_s25 = ssub.s32 %s2976_s20, %s3067_s23  ;;  %p287_p0 = scmp.ne.s32.totalorder %s2972_s19, %s2968_s18 }
   0x8   : > { %p275_p1 = scmp.eq.s32.totalorder %s274_s25, 0  ;;  %p288_p2 = scmp.eq.s32.totalorder %s3063_s21, 1 }
   0x9   : > { %p293_p3 = scmp.ne.s32.totalorder %s2968_s18, %s2964_s17  ;;  %p294_p4 = scmp.eq.s32.totalorder %s2455_s22, 1 }
   0xa   : > { %s3078_s26 = scalar_select %p275_p1, %s2972_s19, %s277_s24  }
   0xb   : > { %p3080_p5 = por %p288_p2, %p287_p0  ;;  %p3084_p6 = por %p294_p4, %p293_p3 }
   0xc   : > { %3486 = sst [smem:[#allocation5_spill]] %s3078_s26  ;;  %p2458_p7 = scmp.ge.s32.totalorder %s2976_s20, 1 }
   0xd   : > { %p357_p8 = scmp.lt.s32.totalorder %s2976_s20, 3 }
   0xf   : > { %p358_p9 = pnand %p2458_p7, %p357_p8 }
  0x10   : > { %v419_v0 = vld [vmem:[%s3476_s3] sm:$0xff] (!%p358_p9)  ;;  %v420_v1 = vld [vmem:[%s3476_s3 + $0x8] sm:$0xff] (!%p358_p9)  ;;  %v2978_v3 = vmov (!%p358_p9), 0.0|0.0   ;;  %v421_v6 = vld [vmem:[%s3476_s3 + $0x10] sm:$0xff] (!%p358_p9)  ;;  %p404_p10 = scmp.lt.s32.totalorder (!%p358_p9), %s3063_s21, 1  ;;  %vm2979_vm0 = vmmov (!%p358_p9), 0  }
  0x11   : > { %361 = sbr.rel (%p358_p9) target bundleno = 1089 (0x441), region = 64  ;;  %v423_v2 = vld [vmem:[%s3476_s3 + $0x20] sm:$0xff] (!%p358_p9)  ;;  %2784 = vmatprep.subr.bf16.mxu0 (!%p358_p9), %v2978_v3  ;;  %2790 = vmatprep.subr.bf16.mxu1 (!%p358_p9), %v2978_v3  ;;  %v2785_v4 = vpack.c.bf16 (!%p358_p9), %v420_v1, %v419_v0  ;;  %v424_v5 = vld [vmem:[%s3476_s3 + $0x28] sm:$0xff] (!%p358_p9)  ;;  %v422_v7 = vld [vmem:[%s3476_s3 + $0x18] sm:$0xff] (!%p358_p9)  ;;  %v2980_v11 = vmov (!%p358_p9), 0.0   ;;  %s3489_s0 = sld [smem:[#allocation6_spill]] (!%p358_p9) }
  0x12   : > { %v2791_v8 = vpack.c.bf16 (!%p358_p9), %v424_v5, %v423_v2  ;;  %v425_v9 = vld [vmem:[%s3476_s3 + $0x30] sm:$0xff] (!%p358_p9)  ;;  %v426_v10 = vld [vmem:[%s3476_s3 + $0x38] sm:$0xff] (!%p358_p9)  ;;  %2600 = vmatprep.mubr.msk.f32.mxu0 (!%p358_p9), %vm2979_vm0, %v2980_v11  ;;  %2611 = vmatprep.mubr.msk.f32.mxu1 (!%p358_p9), %vm2979_vm0, %v2980_v11  ;;  %v2788_v12 = vpack.c.bf16 (!%p358_p9), %v422_v7, %v421_v6  ;;  %v427_v14 = vld [vmem:[%s3476_s3 + $0x40] sm:$0xff] (!%p358_p9)  ;;  %vm463_vm1 = vcmask (!%p358_p9), 261120   ;;  %vm1405_vm2 = vcmask (!%p358_p9), 64512   ;;  %s401_s29 = sand.u32 (!%p358_p9), 1, %s2968_s18  }
  0x13   : > { %2786 = vmatpush3.bf16.msra.mxu0 (!%p358_p9), %v2785_v4  ;;  %v2794_v13 = vpack.c.bf16 (!%p358_p9), %v426_v10, %v425_v9  ;;  %v428_v15 = vld [vmem:[%s3476_s3 + $0x48] sm:$0xff] (!%p358_p9)  ;;  %v431_v16 = vld [vmem:[%s3476_s3 + $0x60] sm:$0xff] (!%p358_p9)  ;;  %v429_v21 = vld [vmem:[%s3476_s3 + $0x50] sm:$0xff] (!%p358_p9)  ;;  %s2505_s13 = sshll.u32 (!%p358_p9), %s3063_s21, 7  ;;  %s2359_s25 = scalar_lea.sflag (!%p358_p9), [#allocation3], %s401_s29 }
  0x14   : > { %2792 = vmatpush3.bf16.msra.mxu1 (!%p358_p9), %v2791_v8  ;;  %2787 = vmatprep.subr.bf16.mxu0 (!%p358_p9), %v2978_v3  ;;  %v432_v17 = vld [vmem:[%s3476_s3 + $0x68] sm:$0xff] (!%p358_p9)  ;;  %v2797_v19 = vpack.c.bf16 (!%p358_p9), %v428_v15, %v427_v14  ;;  %v430_v22 = vld [vmem:[%s3476_s3 + $0x58] sm:$0xff] (!%p358_p9)  ;;  %v433_v23 = vld [vmem:[%s3476_s3 + $0x70] sm:$0xff] (!%p358_p9) }
  0x15   : > { %2793 = vmatprep.subr.bf16.mxu1 (!%p358_p9), %v2978_v3  ;;  %v2803_v20 = vpack.c.bf16 (!%p358_p9), %v432_v17, %v431_v16  ;;  %v434_v24 = vld [vmem:[%s3476_s3 + $0x78] sm:$0xff] (!%p358_p9)  ;;  %v2800_v25 = vpack.c.bf16 (!%p358_p9), %v430_v22, %v429_v21  ;;  %v747_v27 = vld [vmem:[%s3478_s5] sm:$0xff] (!%p358_p9)  ;;  %v748_v28 = vld [vmem:[%s3478_s5 + $0x8] sm:$0xff] (!%p358_p9) }
  0x16   : > { %v2806_v26 = vpack.c.bf16 (!%p358_p9), %v434_v24, %v433_v23  ;;  %v751_v29 = vld [vmem:[%s3478_s5 + $0x20] sm:$0xff] (!%p358_p9)  ;;  %v752_v30 = vld [vmem:[%s3478_s5 + $0x28] sm:$0xff] (!%p358_p9)  ;;  %v2809_v31 = vpack.c.bf16 (!%p358_p9), %v748_v28, %v747_v27  ;;  %v749_v33 = vld [vmem:[%s3478_s5 + $0x10] sm:$0xff] (!%p358_p9) }
  0x17   : > { %2789 = vmatpush3.bf16.msra.mxu0 (!%p358_p9), %v2788_v12  ;;  %v2815_v32 = vpack.c.bf16 (!%p358_p9), %v752_v30, %v751_v29  ;;  %v750_v34 = vld [vmem:[%s3478_s5 + $0x18] sm:$0xff] (!%p358_p9)  ;;  %v753_v35 = vld [vmem:[%s3478_s5 + $0x30] sm:$0xff] (!%p358_p9)  ;;  %v755_v39 = vld [vmem:[%s3478_s5 + $0x40] sm:$0xff] (!%p358_p9) }
  0x18   : > { %s405_s16 = scalar_select %p404_p10, %s3063_s21, 1  ;;  %2795 = vmatpush3.bf16.msra.mxu1 %v2794_v13  ;;  %2796 = vmatprep.subr.bf16.mxu0 %v2978_v3  ;;  %v754_v36 = vld [vmem:[%s3478_s5 + $0x38] sm:$0xff]  ;;  %v2812_v37 = vpack.c.bf16 %v750_v34, %v749_v33  ;;  %v756_v40 = vld [vmem:[%s3478_s5 + $0x48] sm:$0xff]  ;;  %v759_v41 = vld [vmem:[%s3478_s5 + $0x60] sm:$0xff] }
  0x19   : > { %2802 = vmatprep.subr.bf16.mxu1 %v2978_v3  ;;  %v2818_v38 = vpack.c.bf16 %v754_v36, %v753_v35  ;;  %v760_v42 = vld [vmem:[%s3478_s5 + $0x68] sm:$0xff]  ;;  %v2821_v44 = vpack.c.bf16 %v756_v40, %v755_v39  ;;  %v757_v46 = vld [vmem:[%s3478_s5 + $0x50] sm:$0xff]  ;;  %v758_v47 = vld [vmem:[%s3478_s5 + $0x58] sm:$0xff]  ;;  %s2981_s21 = smov [#allocation2]  }
  0x1a   : > { %s3130_s30 = sshll.u32 %s405_s16, 3  ;;  %v2827_v45 = vpack.c.bf16 %v760_v42, %v759_v41  ;;  %v761_v48 = vld [vmem:[%s3478_s5 + $0x70] sm:$0xff]  ;;  %v762_v49 = vld [vmem:[%s3478_s5 + $0x78] sm:$0xff]  ;;  %v2824_v50 = vpack.c.bf16 %v758_v47, %v757_v46  ;;  %v1074_v52 = vld [vmem:[%s3480_s7] sm:$0xff]  ;;  %s3430_s16 = scalar_lea.hbm %s3484_s11, %s2505_s13 }
  0x1b   : > { %s407_s24 = scalar_lea.vmem %s3489_s0, %s3130_s30  ;;  %s411_s14 = scalar_lea.vmem %s3474_s1, %s3130_s30  ;;  %v2830_v51 = vpack.c.bf16 %v762_v49, %v761_v48  ;;  %v1075_v53 = vld [vmem:[%s3480_s7 + $0x8] sm:$0xff]  ;;  %v1078_v54 = vld [vmem:[%s3480_s7 + $0x20] sm:$0xff]  ;;  %v1076_v58 = vld [vmem:[%s3480_s7 + $0x10] sm:$0xff] }
  0x1c   : > { %v416_v18 = vld [vmem:[%s407_s24] sm:$0xff]  ;;  %v1079_v55 = vld [vmem:[%s3480_s7 + $0x28] sm:$0xff]  ;;  %v2833_v56 = vpack.c.bf16 %v1075_v53, %v1074_v52  ;;  %v1077_v59 = vld [vmem:[%s3480_s7 + $0x18] sm:$0xff]  ;;  %s2459_s0 = sshll.u32 %s401_s29, 3 }
  0x1d   : > { %2601 = vmatmul.mubr.msk.f32.vlgmr.msra.gmra.mrb[0].mxu0 %vm463_vm1, %v416_v18  ;;  %2612 = vmatmul.mubr.msk.f32.vlgmr.msra.gmra.mrb[0].mxu1 %vm463_vm1, %v416_v18  ;;  %v417_v43 = vld [vmem:[%s411_s14] sm:$0xff]  ;;  %v2839_v57 = vpack.c.bf16 %v1079_v55, %v1078_v54  ;;  %v1080_v60 = vld [vmem:[%s3480_s7 + $0x30] sm:$0xff]  ;;  %v2836_v61 = vpack.c.bf16 %v1077_v59, %v1076_v58  ;;  %v1081_v62 = vld [vmem:[%s3480_s7 + $0x38] sm:$0xff]  ;;  %s415_s14 = scalar_lea.vmem %s3475_s2, %s3130_s30  ;;  %s403_s15 = scalar_lea.vmem [#allocation2], %s2459_s0 }
  0x1e   : > { %2798 = vmatpush3.bf16.msra.mxu0 %v2797_v19  ;;  %2804 = vmatpush3.bf16.msra.mxu1 %v2803_v20  ;;  %v2842_v63 = vpack.c.bf16 %v1081_v62, %v1080_v60  ;;  %v1082_v0 = vld [vmem:[%s3480_s7 + $0x40] sm:$0xff]  ;;  %v1083_v1 = vld [vmem:[%s3480_s7 + $0x48] sm:$0xff]  ;;  %v1084_v8 = vld [vmem:[%s3480_s7 + $0x50] sm:$0xff]  ;;  %s2372_s22 = sshll.u32 %s403_s15, 4  ;;  %s2918_s0 = sshll.u32 %s2981_s21, 4  ;;  %s3432_s22 = int_to_ptr.vmem [resolvable:$true] %s2372_s22  ;;  %s2919_s0 = int_to_ptr.vmem [resolvable:$false] %s2918_s0 }
  0x1f   : > { %2799 = vmatprep.subr.bf16.mxu0 %v2978_v3  ;;  %2805 = vmatprep.subr.bf16.mxu1 %v2978_v3  ;;  %v1086_v2 = vld [vmem:[%s3480_s7 + $0x60] sm:$0xff]  ;;  %v2845_v5 = vpack.c.bf16 %v1083_v1, %v1082_v0  ;;  %v1087_v6 = vld [vmem:[%s3480_s7 + $0x68] sm:$0xff]  ;;  %v1085_v9 = vld [vmem:[%s3480_s7 + $0x58] sm:$0xff]  ;;  %s2920_s12 = scalar_lea.vmem %s2919_s0, 256  ;;  %p2921_p0 = scmp.lt.s32.totalorder %s3432_s22, %s2919_s0 }
  0x20   : > { %2622 = vmatprep.mubr.msk.f32.mxu0 %vm2979_vm0, %v2980_v11  ;;  %2633 = vmatprep.mubr.msk.f32.mxu1 %vm2979_vm0, %v2980_v11  ;;  %v418_v4 = vld [vmem:[%s415_s14] sm:$0xff]  ;;  %v2851_v7 = vpack.c.bf16 %v1087_v6, %v1086_v2  ;;  %v1088_v10 = vld [vmem:[%s3480_s7 + $0x70] sm:$0xff]  ;;  %v2848_v12 = vpack.c.bf16 %v1085_v9, %v1084_v8  ;;  %v1089_v13 = vld [vmem:[%s3480_s7 + $0x78] sm:$0xff]  ;;  %s2914_s14 = scalar_lea.vmem %s3432_s22, 128 }
  0x21   : > { %v2854_v14 = vpack.c.bf16 %v1089_v13, %v1088_v10  ;;  %v2463_v22 = vld [vmem:[%s3477_s4] ss:$0 sm:$0xff]  ;;  %v2464_v23 = vld [vmem:[%s3477_s4 + $0x1] ss:$0 sm:$0xff]  ;;  %v2465_v36 = vld [vmem:[%s3477_s4 + $0x2] ss:$0 sm:$0xff]  ;;  %p2915_p11 = scmp.ne.s32.totalorder %s3432_s22, %s2914_s14  ;;  %p2922_p1 = scmp.lt.s32.totalorder %s2920_s12, %s2914_s14 }
  0x22   : > { %2801 = vmatpush3.bf16.msra.mxu0 %v2800_v25  ;;  %2807 = vmatpush3.bf16.msra.mxu1 %v2806_v26  ;;  %v2471_v24 = vld [vmem:[%s3479_s6] ss:$0 sm:$0xff]  ;;  %v2472_v25 = vld [vmem:[%s3479_s6 + $0x1] ss:$0 sm:$0xff]  ;;  %v2474_v39 = vld [vmem:[%s3479_s6 + $0x3] ss:$0 sm:$0xff] }
  0x23   : > { %2808 = vmatprep.subr.bf16.mxu0 %v2978_v3  ;;  %2814 = vmatprep.subr.bf16.mxu1 %v2978_v3  ;;  %p2916_p12 = pnand %p2915_p11, %p3080_p5  ;;  %p2923_p2 = por %p2922_p1, %p2921_p0 }
  0x25   : > { %2623 = vmatmul.mubr.msk.f32.vlgmr.msra.gmra.mrb[2].mxu0 %vm463_vm1, %v416_v18  ;;  %2634 = vmatmul.mubr.msk.f32.vlgmr.msra.gmra.mrb[2].mxu1 %vm463_vm1, %v416_v18  ;;  %p2917_p13 = pneg %p2916_p12 }
  0x26   : > { %2810 = vmatpush3.bf16.msra.mxu0 %v2809_v31  ;;  %2816 = vmatpush3.bf16.msra.mxu1 %v2815_v32 }
  0x27   : > { %2811 = vmatprep.subr.bf16.mxu0 %v2978_v3  ;;  %2817 = vmatprep.subr.bf16.mxu1 %v2978_v3  ;;  %p2924_p3 = pnand %p2923_p2, %p2917_p13 }
  0x28   : > { %2644 = vmatprep.mubr.msk.f32.mxu0 %vm2979_vm0, %v2980_v11  ;;  %2655 = vmatprep.mubr.msk.f32.mxu1 %vm2979_vm0, %v2980_v11 }
  0x2a   : > { %2813 = vmatpush3.bf16.msra.mxu0 %v2812_v37  ;;  %2819 = vmatpush3.bf16.msra.mxu1 %v2818_v38  ;;  %v2466_v37 = vld [vmem:[%s3477_s4 + $0x3] ss:$0 sm:$0xff]  ;;  %v2473_v38 = vld [vmem:[%s3479_s6 + $0x2] ss:$0 sm:$0xff] }
  0x2b   : > { %2820 = vmatprep.subr.bf16.mxu0 %v2978_v3  ;;  %2826 = vmatprep.subr.bf16.mxu1 %v2978_v3 }
  0x2d   : > { %2645 = vmatmul.mubr.msk.f32.vlgmr.msra.gmra.mrb[4].mxu0 %vm463_vm1, %v417_v43  ;;  %2656 = vmatmul.mubr.msk.f32.vlgmr.msra.gmra.mrb[4].mxu1 %vm463_vm1, %v417_v43 }
  0x2e   : > { %2822 = vmatpush3.bf16.msra.mxu0 %v2821_v44  ;;  %2828 = vmatpush3.bf16.msra.mxu1 %v2827_v45 }
  0x2f   : > { %2823 = vmatprep.subr.bf16.mxu0 %v2978_v3  ;;  %2829 = vmatprep.subr.bf16.mxu1 %v2978_v3 }
  0x30   : > { %2666 = vmatprep.mubr.msk.f32.mxu0 %vm2979_vm0, %v2980_v11  ;;  %2677 = vmatprep.mubr.msk.f32.mxu1 %vm2979_vm0, %v2980_v11 }
  0x32   : > { %2825 = vmatpush3.bf16.msra.mxu0 %v2824_v50  ;;  %2831 = vmatpush3.bf16.msra.mxu1 %v2830_v51  ;;  %v2479_v50 = vld [vmem:[%s3481_s8] ss:$0 sm:$0xff]  ;;  %v2480_v51 = vld [vmem:[%s3481_s8 + $0x1] ss:$0 sm:$0xff] }
  0x33   : > { %2832 = vmatprep.subr.bf16.mxu0 %v2978_v3  ;;  %2838 = vmatprep.subr.bf16.mxu1 %v2978_v3 }
  0x35   : > { %2667 = vmatmul.mubr.msk.f32.vlgmr.msra.gmra.mrb[6].mxu0 %vm463_vm1, %v417_v43  ;;  %2678 = vmatmul.mubr.msk.f32.vlgmr.msra.gmra.mrb[6].mxu1 %vm463_vm1, %v417_v43 }
  0x36   : > { %2834 = vmatpush3.bf16.msra.mxu0 %v2833_v56  ;;  %2840 = vmatpush3.bf16.msra.mxu1 %v2839_v57 }
  0x37   : > { %2835 = vmatprep.subr.bf16.mxu0 %v2978_v3  ;;  %2841 = vmatprep.subr.bf16.mxu1 %v2978_v3 }
  0x38   : > { %2688 = vmatprep.mubr.msk.f32.mxu0 %vm2979_vm0, %v2980_v11  ;;  %2699 = vmatprep.mubr.msk.f32.mxu1 %vm2979_vm0, %v2980_v11 }
  0x3a   : > { %2837 = vmatpush3.bf16.msra.mxu0 %v2836_v61  ;;  %2843 = vmatpush3.bf16.msra.mxu1 %v2842_v63 }
  0x3b   : > { %2844 = vmatprep.subr.bf16.mxu0 %v2978_v3  ;;  %2850 = vmatprep.subr.bf16.mxu1 %v2978_v3 }
  0x3d   : > { %2689 = vmatmul.mubr.msk.f32.vlgmr.msra.gmra.mrb[8].mxu0 %vm463_vm1, %v418_v4  ;;  %2700 = vmatmul.mubr.msk.f32.vlgmr.msra.gmra.mrb[8].mxu1 %vm463_vm1, %v418_v4 }
  0x3e   : > { %2846 = vmatpush3.bf16.msra.mxu0 %v2845_v5  ;;  %2852 = vmatpush3.bf16.msra.mxu1 %v2851_v7 }
  0x3f   : > { %2847 = vmatprep.subr.bf16.mxu0 %v2978_v3  ;;  %2853 = vmatprep.subr.bf16.mxu1 %v2978_v3 }
  0x40   : > { %2710 = vmatprep.mubr.msk.f32.mxu0 %vm2979_vm0, %v2980_v11  ;;  %2721 = vmatprep.mubr.msk.f32.mxu1 %vm2979_vm0, %v2980_v11 }
  0x42   : > { %2849 = vmatpush3.bf16.msra.mxu0 %v2848_v12  ;;  %2855 = vmatpush3.bf16.msra.mxu1 %v2854_v14 }
  0x43   : > { %2724 = vmatprep.subr.mxu0 %v2980_v11  ;;  %2729 = vmatprep.subr.mxu1 %v2980_v11 }
  0x45   : > { %2711 = vmatmul.mubr.msk.f32.vlgmr.msra.gmra.mrb[10].mxu0 %vm463_vm1, %v418_v4  ;;  %2722 = vmatmul.mubr.msk.f32.vlgmr.msra.gmra.mrb[10].mxu1 %vm463_vm1, %v418_v4 }
  0x46   : > { %2726 = vmatprep.mubr.msk.f32.mxu0 %vm2979_vm0, %v2980_v11  ;;  %2731 = vmatprep.mubr.msk.f32.mxu1 %vm2979_vm0, %v2980_v11 }
  0xf0   : > { %v533_v3 = vpop.f32.mrb[0].mxu0  ;;  %v603_v16 = vpop.f32.mrb[0].mxu1 }
  0xf1   : > { %v2602_v15 = vpop.f32.mrb[1].mxu0  ;;  %v2613_v17 = vpop.f32.mrb[1].mxu1  ;;  %v534_v26 = vadd.f32 %v2463_v22, %v533_v3  ;;  %v604_v28 = vadd.f32 %v2464_v23, %v603_v16 }
  0xf3   : > { %v1401_v34 = vmul.f32 0.35355338, %v534_v26  ;;  %v1402_v35 = vmul.f32 0.35355338, %v604_v28  ;;  %v2482_v26 = vld [vmem:[%s3481_s8 + $0x3] ss:$0 sm:$0xff] }
  0xf8   : > { %v673_v18 = vpop.f32.mrb[2].mxu0  ;;  %v743_v20 = vpop.f32.mrb[2].mxu1 }
  0xf9   : > { %v2624_v19 = vpop.f32.mrb[3].mxu0  ;;  %v2635_v21 = vpop.f32.mrb[3].mxu1  ;;  %v674_v40 = vadd.f32 %v2465_v36, %v673_v18  ;;  %v744_v42 = vadd.f32 %v2466_v37, %v743_v20  ;;  %v2481_v20 = vld [vmem:[%s3481_s8 + $0x2] ss:$0 sm:$0xff]  ;;  %v2047_v36 = vld [vmem:[%s3482_s9 + $0x8] sm:$0xff] }
  0xfb   : > { %v1403_v48 = vmul.f32 0.35355338, %v674_v40  ;;  %v1404_v49 = vmul.f32 0.35355338, %v744_v42 }
 0x100   : > { %v860_v27 = vpop.f32.mrb[4].mxu0  ;;  %v930_v30 = vpop.f32.mrb[4].mxu1 }
 0x101   : > { %v861_v29 = vadd.f32 %v2471_v24, %v860_v27  ;;  %v2646_v31 = vpop.f32.mrb[5].mxu0  ;;  %v931_v32 = vadd.f32 %v2472_v25, %v930_v30  ;;  %v2657_v33 = vpop.f32.mrb[5].mxu1 }
 0x103   : > { %2725 = vmatpush3.xpose.msk.msra.mxu0 %vm1405_vm2, %v861_v29  ;;  %2730 = vmatpush3.xpose.msk.msra.mxu1 %vm1405_vm2, %v931_v32 }
 0x104   : > { %2734 = vmatprep.subr.mxu0 %v2980_v11  ;;  %2739 = vmatprep.subr.mxu1 %v2980_v11 }
 0x106   : > { %2727 = vmatmul.mubr.msk.f32.vlgmr.msra.gmra.mrb[12].mxu0 %vm1405_vm2, %v1401_v34  ;;  %2732 = vmatmul.mubr.msk.f32.vlgmr.msra.gmra.mrb[12].mxu1 %vm1405_vm2, %v1402_v35  ;;  %v2046_v35 = vld [vmem:[%s3482_s9] sm:$0xff] }
 0x107   : > { %2736 = vmatprep.mubr.msk.f32.mxu0 %vm2979_vm0, %v2980_v11  ;;  %2741 = vmatprep.mubr.msk.f32.mxu1 %vm2979_vm0, %v2980_v11 }
 0x108   : > { %v1000_v41 = vpop.f32.mrb[6].mxu0  ;;  %v1070_v44 = vpop.f32.mrb[6].mxu1 }
 0x109   : > { %v1001_v43 = vadd.f32 %v2473_v38, %v1000_v41  ;;  %v2668_v45 = vpop.f32.mrb[7].mxu0  ;;  %v1071_v46 = vadd.f32 %v2474_v39, %v1070_v44  ;;  %v2679_v47 = vpop.f32.mrb[7].mxu1 }
 0x10a   : > { %v2048_v45 = vld [vmem:[%s3482_s9 + $0x10] sm:$0xff] }
 0x10b   : > { %2735 = vmatpush3.xpose.msk.msra.mxu0 %vm1405_vm2, %v1001_v43  ;;  %2740 = vmatpush3.xpose.msk.msra.mxu1 %vm1405_vm2, %v1071_v46 }
 0x10c   : > { %2744 = vmatprep.subr.mxu0 %v2980_v11  ;;  %2749 = vmatprep.subr.mxu1 %v2980_v11 }
 0x10e   : > { %2737 = vmatmul.mubr.msk.f32.vlgmr.msra.gmra.mrb[14].mxu0 %vm1405_vm2, %v1403_v48  ;;  %2742 = vmatmul.mubr.msk.f32.vlgmr.msra.gmra.mrb[14].mxu1 %vm1405_vm2, %v1404_v49 }
 0x10f   : > { %2746 = vmatprep.mubr.msk.f32.mxu0 %vm2979_vm0, %v2980_v11  ;;  %2751 = vmatprep.mubr.msk.f32.mxu1 %vm2979_vm0, %v2980_v11 }
 0x110   : > { %v1187_v52 = vpop.f32.mrb[8].mxu0  ;;  %v1257_v55 = vpop.f32.mrb[8].mxu1 }
 0x111   : > { %v1188_v53 = vadd.f32 %v2479_v50, %v1187_v52  ;;  %v2690_v54 = vpop.f32.mrb[9].mxu0  ;;  %v1258_v56 = vadd.f32 %v2480_v51, %v1257_v55  ;;  %v2701_v57 = vpop.f32.mrb[9].mxu1  ;;  %v2049_v50 = vld [vmem:[%s3482_s9 + $0x18] sm:$0xff] }
 0x113   : > { %2745 = vmatpush3.msra.mxu0 %v1188_v53  ;;  %2750 = vmatpush3.msra.mxu1 %v1258_v56 }
 0x114   : > { %2754 = vmatprep.subr.mxu0 %v2980_v11  ;;  %2759 = vmatprep.subr.mxu1 %v2980_v11 }
 0x118   : > { %v1327_v58 = vpop.f32.mrb[10].mxu0  ;;  %v1397_v59 = vpop.f32.mrb[10].mxu1 }
 0x119   : > { %v2712_v60 = vpop.f32.mrb[11].mxu0  ;;  %v2723_v61 = vpop.f32.mrb[11].mxu1  ;;  %v1328_v24 = vadd.f32 %v2481_v20, %v1327_v58  ;;  %v1398_v29 = vadd.f32 %v2482_v26, %v1397_v59 }
 0x1d9   : > { %v1478_v62 = vpop.f32.mrb[12].mxu0  ;;  %v1554_v63 = vpop.f32.mrb[12].mxu1 }
 0x1da   : > { %v2728_v0 = vpop.f32.mrb[13].mxu0  ;;  %v1710_v1 = vsel %vm1405_vm2, %v1478_v62, -inf  ;;  %v2733_v2 = vpop.f32.mrb[13].mxu1  ;;  %v1713_v4 = vsel %vm1405_vm2, %v1554_v63, -inf }
 0x1db   : > { %1711 = vmax.xlane.f32.xlu0 %v1710_v1 }
 0x1df   : > { %1714 = vmax.xlane.f32.xlu0 %v1713_v4 }
 0x1e1   : > { %v1630_v5 = vpop.f32.mrb[14].mxu0  ;;  %v1706_v6 = vpop.f32.mrb[14].mxu1 }
 0x1e2   : > { %v2738_v7 = vpop.f32.mrb[15].mxu0  ;;  %v1716_v8 = vsel %vm1405_vm2, %v1630_v5, -inf  ;;  %v2743_v9 = vpop.f32.mrb[15].mxu1  ;;  %v1719_v10 = vsel %vm1405_vm2, %v1706_v6, -inf }
 0x1e3   : > { %1717 = vmax.xlane.f32.xlu1 %v1716_v8  ;;  %v2503_v8 = vld [vmem:[%s3483_s10] ss:$0 sm:$0xff] }
 0x1e7   : > { %1720 = vmax.xlane.f32.xlu1 %v1719_v10 }
 0x268   : > { %v1712_v12 = vpop.xlane.xlu0 %1711 }
 0x269   : > { %v1722_v13 = vsub.f32 %v1478_v62, %v1712_v12 }
 0x26b   : > { %v1726_v14 = vmul.f32 1.442695, %v1722_v13 }
 0x26c   : > { %v1715_v3 = vpop.xlane.xlu0 %1714 }
 0x26d   : > { %2898 = vpow2.f32 %v1726_v14  ;;  %v1723_v15 = vsub.f32 %v1554_v63, %v1715_v3 }
 0x26f   : > { %v1728_v16 = vmul.f32 1.442695, %v1723_v15 }
 0x270   : > { %v1718_v17 = vpop.xlane.xlu1 %1717 }
 0x271   : > { %2900 = vpow2.f32 %v1728_v16  ;;  %v1724_v18 = vsub.f32 %v1630_v5, %v1718_v17 }
 0x273   : > { %v1730_v19 = vmul.f32 1.442695, %v1724_v18 }
 0x274   : > { %v1721_v21 = vpop.xlane.xlu1 %1720 }
 0x275   : > { %2902 = vpow2.f32 %v1730_v19  ;;  %v1725_v22 = vsub.f32 %v1706_v6, %v1721_v21 }
 0x277   : > { %v2899_v23 = vpop.eup %2898  ;;  %v1732_v25 = vmul.f32 1.442695, %v1725_v22 }
 0x278   : > { %2747 = vmatmul.mubr.msk.f32.vlgmr.msra.gmra.mrb[16].mxu0 %vm1405_vm2, %v2899_v23  ;;  %v1734_v27 = vsel %vm1405_vm2, %v2899_v23, 0.0 }
 0x279   : > { %2904 = vpow2.f32 %v1732_v25  ;;  %2755 = vmatpush3.msra.mxu0 %v1328_v24  ;;  %1735 = vadd.xlane.f32.xlu0 %v1734_v27 }
 0x27a   : > { %2756 = vmatprep.mubr.msk.f32.mxu0 %vm2979_vm0, %v2980_v11  ;;  %2764 = vmatprep.subr.mxu0 %v2980_v11 }
 0x27b   : > { %v2901_v28 = vpop.eup %2900 }
 0x27c   : > { %2752 = vmatmul.mubr.msk.f32.vlgmr.msra.gmra.mrb[16].mxu1 %vm1405_vm2, %v2901_v28  ;;  %v1737_v30 = vsel %vm1405_vm2, %v2901_v28, 0.0 }
 0x27d   : > { %2760 = vmatpush3.msra.mxu1 %v1398_v29  ;;  %1738 = vadd.xlane.f32.xlu1 %v1737_v30 }
 0x27e   : > { %2761 = vmatprep.mubr.msk.f32.mxu1 %vm2979_vm0, %v2980_v11  ;;  %2769 = vmatprep.subr.mxu1 %v2980_v11 }
 0x27f   : > { %v2903_v31 = vpop.eup %2902 }
 0x280   : > { %2757 = vmatmul.mubr.msk.f32.vlgmr.msra.gmra.mrb[18].mxu0 %vm1405_vm2, %v2903_v31  ;;  %v1740_v32 = vsel %vm1405_vm2, %v2903_v31, 0.0 }
 0x281   : > { %1741 = vadd.xlane.f32.xlu0 %v1740_v32  ;;  %2766 = vmatprep.mubr.msk.f32.mxu0 %vm2979_vm0, %v2980_v11 }
 0x282   : > { %2765 = vmatpush3.msra.mxu0 %v2046_v35 }
 0x283   : > { %v2905_v33 = vpop.eup %2904  ;;  %2774 = vmatprep.subr.mxu0 %v2980_v11 }
 0x284   : > { %2762 = vmatmul.mubr.msk.f32.vlgmr.msra.gmra.mrb[18].mxu1 %vm1405_vm2, %v2905_v33  ;;  %v1743_v34 = vsel %vm1405_vm2, %v2905_v33, 0.0 }
 0x285   : > { %1744 = vadd.xlane.f32.xlu1 %v1743_v34  ;;  %2771 = vmatprep.mubr.msk.f32.mxu1 %vm2979_vm0, %v2980_v11 }
 0x286   : > { %2770 = vmatpush3.msra.mxu1 %v2047_v36 }
 0x287   : > { %2779 = vmatprep.subr.mxu1 %v2980_v11 }
 0x306   : > { %v1736_v37 = vpop.xlane.xlu0 %1735 }
 0x307   : > { %2906 = vrcp.f32 %v1736_v37 }
 0x30a   : > { %v1739_v38 = vpop.xlane.xlu1 %1738 }
 0x30b   : > { %2908 = vrcp.f32 %v1739_v38 }
 0x30e   : > { %v1742_v39 = vpop.xlane.xlu0 %1741 }
 0x30f   : > { %2910 = vrcp.f32 %v1742_v39 }
 0x311   : > { %v2907_v41 = vpop.eup %2906 }
 0x312   : > { %v1745_v40 = vpop.xlane.xlu1 %1744 }
 0x313   : > { %2912 = vrcp.f32 %v1745_v40 }
 0x315   : > { %v2909_v46 = vpop.eup %2908 }
 0x319   : > { %v2911_v51 = vpop.eup %2910 }
 0x31d   : > { %v2913_v55 = vpop.eup %2912 }
 0x34b   : > { %v1815_v42 = vpop.f32.mrb[16].mxu0 }
 0x34c   : > { %v2042_v43 = vmul.f32 %v2907_v41, %v1815_v42  ;;  %v2748_v44 = vpop.f32.mrb[17].mxu0 }
 0x34e   : > { %2767 = vmatmul.mubr.msk.f32.vlgmr.msra.gmra.mrb[20].mxu0 %vm1405_vm2, %v2042_v43 }
 0x34f   : > { %v1888_v47 = vpop.f32.mrb[16].mxu1  ;;  %2775 = vmatpush3.msra.mxu0 %v2048_v45  ;;  %2776 = vmatprep.mubr.msk.f32.mxu0 %vm2979_vm0, %v2980_v11 }
 0x350   : > { %v2043_v48 = vmul.f32 %v2909_v46, %v1888_v47  ;;  %v2753_v49 = vpop.f32.mrb[17].mxu1 }
 0x352   : > { %2772 = vmatmul.mubr.msk.f32.vlgmr.msra.gmra.mrb[20].mxu1 %vm1405_vm2, %v2043_v48 }
 0x353   : > { %v1961_v52 = vpop.f32.mrb[18].mxu0  ;;  %2780 = vmatpush3.msra.mxu1 %v2049_v50  ;;  %2781 = vmatprep.mubr.msk.f32.mxu1 %vm2979_vm0, %v2980_v11 }
 0x354   : > { %v2044_v53 = vmul.f32 %v2911_v51, %v1961_v52  ;;  %v2758_v54 = vpop.f32.mrb[19].mxu0 }
 0x356   : > { %2777 = vmatmul.mubr.msk.f32.vlgmr.msra.gmra.mrb[22].mxu0 %vm1405_vm2, %v2044_v53 }
 0x357   : > { %v2034_v56 = vpop.f32.mrb[18].mxu1 }
 0x358   : > { %v2045_v57 = vmul.f32 %v2913_v55, %v2034_v56  ;;  %v2763_v58 = vpop.f32.mrb[19].mxu1 }
 0x35a   : > { %2782 = vmatmul.mubr.msk.f32.vlgmr.msra.gmra.mrb[22].mxu1 %vm1405_vm2, %v2045_v57 }
 0x421   : > { %v2119_v59 = vpop.f32.mrb[20].mxu0 }
 0x422   : > { %v2768_v60 = vpop.f32.mrb[21].mxu0  ;;  %v2342_v62 = vsel %vm463_vm1, %v2119_v59, 0.0 }
 0x425   : > { %v2192_v61 = vpop.f32.mrb[20].mxu1 }
 0x426   : > { %v2343_v63 = vsel %vm463_vm1, %v2192_v61, 0.0  ;;  %v2773_v11 = vpop.f32.mrb[21].mxu1 }
 0x427   : > { %v2344_v0 = vadd.f32 %v2343_v63, %v2342_v62 }
 0x429   : > { %v2265_v1 = vpop.f32.mrb[22].mxu0 }
 0x42a   : > { %v2345_v2 = vsel %vm463_vm1, %v2265_v1, 0.0  ;;  %v2778_v4 = vpop.f32.mrb[23].mxu0 }
 0x42b   : > { %v2346_v5 = vadd.f32 %v2345_v2, %v2344_v0 }
 0x42d   : > { %v2338_v6 = vpop.f32.mrb[22].mxu1 }
 0x42e   : > { %v2347_v7 = vsel %vm463_vm1, %v2338_v6, 0.0  ;;  %v2783_v9 = vpop.f32.mrb[23].mxu1 }
 0x42f   : > { %v2348_v10 = vadd.f32 %v2347_v7, %v2346_v5 }
 0x431   : > { %v2356_v12 = vadd.f32 %v2503_v8, %v2348_v10 }
 0x433   : > { %2357 = vst.msk [vmem:[%s403_s15] sm:$0xff] %vm463_vm1, %v2356_v12 }
 0x434   : > { %2927 = shalt.err (!%p2924_p3)
}
 0x435   : > { %s2928_s29 = scalar_lea.hbm %s3430_s16, 128  ;;  %s2932_s15 = scalar_lea.hbm %s3484_s11, 256 }
 0x436   : > { %p2929_p4 = scmp.ne.s32.totalorder %s3430_s16, %s2928_s29  ;;  %p2933_p9 = scmp.lt.u32.totalorder %s3430_s16, %s3484_s11 }
 0x437   : > { %p2934_p10 = scmp.lt.u32.totalorder %s2932_s15, %s2928_s29  ;;  %p2936_p12 = scmp.lt.u32.totalorder %s2928_s29, %s3430_s16 }
 0x438   : > { %p2930_p7 = pnand %p2929_p4, %p3080_p5 }
 0x439   : > { %p2935_p11 = por %p2934_p10, %p2933_p9 }
 0x43a   : > { %p2931_p8 = pneg %p2930_p7 }
 0x43b   : > { %p2937_p13 = por %p2936_p12, %p2935_p11 }
 0x43d   : > { %p2938_p0 = pnand %p2937_p13, %p2931_p8 }
 0x43f   : > { %2941 = shalt.err (!%p2938_p0)
}
 0x440   : > { %2856 = dma.vmem_to_hbm [thread:$0]  (%p3080_p5), %s3432_s22, 128, %s3430_s16, %s2359_s25  }
 0x441 PF: > { %p2862_p1 = scmp.ge.s32.totalorder %s2976_s20, 2  ;;  %s2384_s14 = sand.u32 1, %s2964_s17  }
 0x442   : > { %s2385_s21 = scalar_lea.sflag [#allocation3], %s2384_s14 }
 0x443   : > { %p2859_p2 = pnand %p2862_p1, %p3084_p6 }
 0x445   : > { %2959 = dma.done.wait (!%p2859_p2), %s2385_s21, 128  }
 0x446   : > { %2961 = vsyncadd (!%p2859_p2), %s2385_s21, 4294967168  ;;  %s3490_s0 = sld [smem:[#allocation5_spill]]  ;;  %p21_p3 = scmp.ge.s32.totalorder %s3067_s23, 4  }
 0x447   : > { %s3491_s17 = smov %s2968_s18  ;;  %s3492_s18 = smov %s2972_s19 }
 0x448   : > { %s3494_s20 = smov %s3067_s23  ;;  %23 = sbr.rel (!%p21_p3) target bundleno = 5 (0x5), region = 105 }
 0x44c   : > { %s3493_s19 = smov %s3490_s0 }
 0x44f   :  { %2390 = vsyncpa [#allocation3], 1 }
 0x450   :  { %2392 = vsyncpa [#allocation3 + $0x1], 1 }

</bundles_post_ra>
